<compile_context>
chip_gen: v5e
topology: v5e:2x2
jax: 0.10.0
libtpu: 0.0.40
codegen_flags: <defaults>
</compile_context>

<pallas_src>
import functools
import math

import jax
import jax.numpy as jnp
from jax import lax
from jax.experimental import pallas as pl
from jax.experimental.pallas import tpu as pltpu


def _mxu_dot(a, b):
    """bf16 x bf16 -> f32-accumulated matmul (native MXU path on v5e/v6e/v7x)."""
    return jnp.dot(a.astype(jnp.bfloat16), b.astype(jnp.bfloat16),
                   preferred_element_type=jnp.float32)


def _layer_norm(x, gamma, beta, eps):
    mean = jnp.mean(x, axis=-1, keepdims=True)
    xc = x - mean
    var = jnp.mean(xc * xc, axis=-1, keepdims=True)
    return xc * lax.rsqrt(var + eps) * gamma + beta


def _cross_attn_kernel(tgt_ref, mem_ref, qpos_ref, kpos_ref,
                       wq_ref, wk_ref, wv_ref, wo_ref,
                       bq_ref, bk_ref, bv_ref, bo_ref,
                       gamma_ref, beta_ref,
                       out_ref, *, nhead, normalize_before, eps):
    # Block views: tgt/qpos/out [1, TQ, E], memory/pos [1, LK, E], weights [E, E],
    # biases / LN params [1, E].
    tgt = tgt_ref[0].astype(jnp.float32)      # [TQ, E]
    mem = mem_ref[0].astype(jnp.float32)      # [LK, E]
    qpos = qpos_ref[0].astype(jnp.float32)
    kpos = kpos_ref[0].astype(jnp.float32)
    gamma = gamma_ref[...]                    # [1, E]
    beta = beta_ref[...]

    d_model = tgt.shape[-1]
    head_dim = d_model // nhead
    scale = 1.0 / math.sqrt(head_dim)

    q_src = _layer_norm(tgt, gamma, beta, eps) if normalize_before else tgt

    q_in = q_src + qpos
    k_in = mem + kpos

    # Fused QKV projections (bf16 MXU, f32 accumulate), bias hoisted (added once).
    q = _mxu_dot(q_in, wq_ref[...]) + bq_ref[...]     # [TQ, E] f32
    k = _mxu_dot(k_in, wk_ref[...]) + bk_ref[...]     # [LK, E] f32
    v = _mxu_dot(mem,  wv_ref[...]) + bv_ref[...]     # [LK, E] f32
    wo = wo_ref[...]                                  # [E, E]

    # Multi-head attention, statically unrolled over heads.
    # concat-over-heads followed by out_proj == sum_h (o_h @ Wo[h-slice, :]).
    attn = jnp.zeros_like(q)
    for h in range(nhead):
        sl = slice(h * head_dim, (h + 1) * head_dim)
        q_h = (q[:, sl] * scale).astype(jnp.bfloat16)  # [TQ, hd]
        k_h = k[:, sl].astype(jnp.bfloat16)            # [LK, hd]
        v_h = v[:, sl].astype(jnp.bfloat16)            # [LK, hd]
        # scores = q_h @ k_h.T  (contract last dims -> MXU trans_b form)
        s = lax.dot_general(q_h, k_h, (((1,), (1,)), ((), ())),
                            preferred_element_type=jnp.float32)   # [TQ, LK]
        s = s - jnp.max(s, axis=-1, keepdims=True)
        p = jnp.exp(s)
        p = p * pl.reciprocal(jnp.sum(p, axis=-1, keepdims=True), approx=True)
        o_h = jnp.dot(p.astype(jnp.bfloat16), v_h,
                      preferred_element_type=jnp.float32)          # [TQ, hd]
        attn = attn + _mxu_dot(o_h, wo[sl, :])                     # [TQ, E]
    attn = attn + bo_ref[...]

    # dropout(p=0.0) is the identity.
    # TODO(synk): training-time dropout (p > 0) via pltpu.prng_* if ever needed.
    x = tgt + attn
    out = x if normalize_before else _layer_norm(x, gamma, beta, eps)
    out_ref[0] = out.astype(out_ref.dtype)


def cross_attention_forward(tgt, memory, query_pos, pos, params, *,
                            nhead, normalize_before=False, eps=1e-5,
                            block_q=None):
    """Batch-first inputs: tgt [B, Lq, E], memory [B, Lk, E]. Returns [B, Lq, E]."""
    wq, wk, wv, wo, bq, bk, bv, bo, gamma, beta = params
    B, Lq, E = tgt.shape
    _, Lk, _ = memory.shape
    assert E % nhead == 0

    if block_q is None:
        block_q = 128 if Lq % 128 == 0 else Lq
    assert Lq % block_q == 0
    grid = (B, Lq // block_q)

    q_spec = pl.BlockSpec((1, block_q, E), lambda b, qi: (b, qi, 0))
    kv_spec = pl.BlockSpec((1, Lk, E), lambda b, qi: (b, 0, 0))
    w_spec = pl.BlockSpec((E, E), lambda b, qi: (0, 0))     # weights stay resident
    vec_spec = pl.BlockSpec((1, E), lambda b, qi: (0, 0))

    kernel = functools.partial(_cross_attn_kernel, nhead=nhead,
                               normalize_before=normalize_before, eps=eps)

    flops = 2 * B * E * E * (2 * Lq + 2 * Lk) + 4 * B * Lq * Lk * E
    bytes_accessed = 4 * (B * (2 * Lq + 2 * Lk) * E + 4 * E * E + 6 * E + B * Lq * E)
    cost = pl.CostEstimate(flops=flops,
                           transcendentals=B * nhead * Lq * Lk + B * Lq,
                           bytes_accessed=bytes_accessed)

    return pl.pallas_call(
        kernel,
        out_shape=jax.ShapeDtypeStruct((B, Lq, E), tgt.dtype),
        grid=grid,
        in_specs=[q_spec, kv_spec, q_spec, kv_spec,
                  w_spec, w_spec, w_spec, w_spec,
                  vec_spec, vec_spec, vec_spec, vec_spec,
                  vec_spec, vec_spec],
        out_specs=pl.BlockSpec((1, block_q, E), lambda b, qi: (b, qi, 0)),
        compiler_params=pltpu.CompilerParams(
            dimension_semantics=("parallel", "parallel"),
            vmem_limit_bytes=64 * 1024 * 1024),
        cost_estimate=cost,
    )(tgt, memory, query_pos, pos, wq, wk, wv, wo,
      bq, bk, bv, bo, gamma, beta)


class CrossAttentionLayerPallas:
    """JAX/Pallas port of the Mask2Former CrossAttentionLayer (inference path)."""

    def __init__(self, d_model, nhead, dropout=0.0, activation='relu',
                 normalize_before=False, *, key):
        assert d_model % nhead == 0
        if activation not in ('relu', 'gelu', 'glu'):
            raise RuntimeError(f'activation should be relu/gelu, not {activation}.')
        self.d_model = d_model
        self.nhead = nhead
        self.dropout = dropout                  # p=0.0 -> identity in forward
        self.normalize_before = normalize_before
        self.eps = 1e-5

        def xavier(k, shape):
            bound = math.sqrt(6.0 / (shape[0] + shape[1]))
            return jax.random.uniform(k, shape, jnp.float32, -bound, bound)

        keys = jax.random.split(key, 10)
        E = d_model
        # Projection weights stored as [in_dim, out_dim] (= torch weight.T).
        self.wq = xavier(keys[0], (E, E))
        self.wk = xavier(keys[1], (E, E))
        self.wv = xavier(keys[2], (E, E))
        self.wo = xavier(keys[3], (E, E))
        # PyTorch initializes these biases to 0 and LN affine to (1, 0); small
        # random values are used here purely so those code paths are exercised.
        self.bq = 0.02 * jax.random.normal(keys[4], (1, E), jnp.float32)
        self.bk = 0.02 * jax.random.normal(keys[5], (1, E), jnp.float32)
        self.bv = 0.02 * jax.random.normal(keys[6], (1, E), jnp.float32)
        self.bo = 0.02 * jax.random.normal(keys[7], (1, E), jnp.float32)
        self.gamma = 1.0 + 0.05 * jax.random.normal(keys[8], (1, E), jnp.float32)
        self.beta = 0.05 * jax.random.normal(keys[9], (1, E), jnp.float32)

    @property
    def params(self):
        return (self.wq, self.wk, self.wv, self.wo,
                self.bq, self.bk, self.bv, self.bo, self.gamma, self.beta)

    def __call__(self, tgt, memory, memory_mask=None, memory_key_padding_mask=None,
                 pos=None, query_pos=None):
        """tgt: [Lq, B, E], memory: [Lk, B, E] (seq-first, as nn.MultiheadAttention)."""
        if memory_mask is not None or memory_key_padding_mask is not None:
            # TODO(synk): additive memory_mask / key_padding_mask (add -inf to scores).
            raise NotImplementedError("attention masks are not supported in this kernel")
        if query_pos is None:
            query_pos = jnp.zeros_like(tgt)
        if pos is None:
            pos = jnp.zeros_like(memory)
        # Batch-first, lane-dense layout for the kernel (layout plumbing only).
        t = jnp.transpose(tgt, (1, 0, 2))
        m = jnp.transpose(memory, (1, 0, 2))
        qp = jnp.transpose(query_pos, (1, 0, 2))
        kp = jnp.transpose(pos, (1, 0, 2))
        out = cross_attention_forward(t, m, qp, kp, self.params,
                                      nhead=self.nhead,
                                      normalize_before=self.normalize_before,
                                      eps=self.eps)
        return jnp.transpose(out, (1, 0, 2))


def _reference_forward(layer, tgt, memory, pos, query_pos):
    """Pure-JAX reference with the same bf16-matmul / f32-accumulate numerics."""
    E, H = layer.d_model, layer.nhead
    hd = E // H
    scale = 1.0 / math.sqrt(hd)

    t = jnp.transpose(tgt, (1, 0, 2)).astype(jnp.float32)        # [B, Lq, E]
    m = jnp.transpose(memory, (1, 0, 2)).astype(jnp.float32)     # [B, Lk, E]
    qp = jnp.transpose(query_pos, (1, 0, 2)).astype(jnp.float32)
    kp = jnp.transpose(pos, (1, 0, 2)).astype(jnp.float32)
    B, Lq, _ = t.shape
    Lk = m.shape[1]

    def mxu(a, b):
        return jnp.dot(a.astype(jnp.bfloat16), b.astype(jnp.bfloat16),
                       preferred_element_type=jnp.float32)

    src = _layer_norm(t, layer.gamma, layer.beta, layer.eps) if layer.normalize_before else t

    q = mxu(src + qp, layer.wq) + layer.bq
    k = mxu(m + kp, layer.wk) + layer.bk
    v = mxu(m, layer.wv) + layer.bv

    qh = (q * scale).reshape(B, Lq, H, hd).astype(jnp.bfloat16)
    kh = k.reshape(B, Lk, H, hd).astype(jnp.bfloat16)
    vh = v.reshape(B, Lk, H, hd).astype(jnp.bfloat16)

    s = jnp.einsum('bqhd,bkhd->bhqk', qh, kh, preferred_element_type=jnp.float32)
    p = jax.nn.softmax(s, axis=-1)
    o = jnp.einsum('bhqk,bkhd->bqhd', p.astype(jnp.bfloat16), vh,
                   preferred_element_type=jnp.float32).reshape(B, Lq, E)
    attn = mxu(o, layer.wo) + layer.bo

    x = t + attn
    out = x if layer.normalize_before else _layer_norm(x, layer.gamma, layer.beta, layer.eps)
    return jnp.transpose(out, (1, 0, 2))


if __name__ == "__main__":
    key = jax.random.PRNGKey(0)
    key, pkey, k1, k2, k3, k4 = jax.random.split(key, 6)

    d_model, nhead = 128, 4            # lane-dense d_model (multiple of 128)
    num_queries, mem_len, batch = 8, 16, 2

    layer = CrossAttentionLayerPallas(d_model, nhead, dropout=0.0,
                                      activation='relu', normalize_before=False,
                                      key=pkey)

    tgt = jax.random.normal(k1, (num_queries, batch, d_model), jnp.float32)
    memory = jax.random.normal(k2, (mem_len, batch, d_model), jnp.float32)
    query_pos = jax.random.normal(k3, (num_queries, batch, d_model), jnp.float32)
    pos = jax.random.normal(k4, (mem_len, batch, d_model), jnp.float32)

    out = layer(tgt, memory, pos=pos, query_pos=query_pos)
    out = jax.block_until_ready(out)

    ref = jax.block_until_ready(_reference_forward(layer, tgt, memory, pos, query_pos))

    assert out.shape == (num_queries, batch, d_model)
    max_err = float(jnp.max(jnp.abs(out - ref)))
    assert jnp.allclose(out, ref, atol=3e-2, rtol=3e-2), max_err

    print("KERNEL_OK")
</pallas_src>

<mosaic_0001>
module attributes {stable_mosaic.version = 11 : i64} {
  func.func @_cross_attn_kernel(%arg0: i32, %arg1: i32, %arg2: memref<1x8x128xf32, #tpu.memory_space<vmem>>, %arg3: memref<1x16x128xf32, #tpu.memory_space<vmem>>, %arg4: memref<1x8x128xf32, #tpu.memory_space<vmem>>, %arg5: memref<1x16x128xf32, #tpu.memory_space<vmem>>, %arg6: memref<128x128xf32, #tpu.memory_space<vmem>>, %arg7: memref<128x128xf32, #tpu.memory_space<vmem>>, %arg8: memref<128x128xf32, #tpu.memory_space<vmem>>, %arg9: memref<128x128xf32, #tpu.memory_space<vmem>>, %arg10: memref<1x128xf32, #tpu.memory_space<vmem>>, %arg11: memref<1x128xf32, #tpu.memory_space<vmem>>, %arg12: memref<1x128xf32, #tpu.memory_space<vmem>>, %arg13: memref<1x128xf32, #tpu.memory_space<vmem>>, %arg14: memref<1x128xf32, #tpu.memory_space<vmem>>, %arg15: memref<1x128xf32, #tpu.memory_space<vmem>>, %arg16: memref<1x8x128xf32, #tpu.memory_space<vmem>>) attributes {dimension_semantics = [#tpu.dimension_semantics<parallel>, #tpu.dimension_semantics<parallel>], iteration_bounds = array<i64: 2, 1>, scalar_prefetch = 0 : i64, scratch_operands = 0 : i64, tpu.core_type = #tpu.core_type<tc>, window_params = [{transform_indices = @transform_0, window_bounds = array<i64: 1, 8, 128>}, {transform_indices = @transform_1, window_bounds = array<i64: 1, 16, 128>}, {transform_indices = @transform_2, window_bounds = array<i64: 1, 8, 128>}, {transform_indices = @transform_3, window_bounds = array<i64: 1, 16, 128>}, {pipeline_mode = #tpu.pipeline_mode<synchronous>, transform_indices = @transform_4, window_bounds = array<i64: 128, 128>}, {pipeline_mode = #tpu.pipeline_mode<synchronous>, transform_indices = @transform_5, window_bounds = array<i64: 128, 128>}, {pipeline_mode = #tpu.pipeline_mode<synchronous>, transform_indices = @transform_6, window_bounds = array<i64: 128, 128>}, {pipeline_mode = #tpu.pipeline_mode<synchronous>, transform_indices = @transform_7, window_bounds = array<i64: 128, 128>}, {pipeline_mode = #tpu.pipeline_mode<synchronous>, transform_indices = @transform_8, window_bounds = array<i64: 1, 128>}, {pipeline_mode = #tpu.pipeline_mode<synchronous>, transform_indices = @transform_9, window_bounds = array<i64: 1, 128>}, {pipeline_mode = #tpu.pipeline_mode<synchronous>, transform_indices = @transform_10, window_bounds = array<i64: 1, 128>}, {pipeline_mode = #tpu.pipeline_mode<synchronous>, transform_indices = @transform_11, window_bounds = array<i64: 1, 128>}, {pipeline_mode = #tpu.pipeline_mode<synchronous>, transform_indices = @transform_12, window_bounds = array<i64: 1, 128>}, {pipeline_mode = #tpu.pipeline_mode<synchronous>, transform_indices = @transform_13, window_bounds = array<i64: 1, 128>}, {transform_indices = @transform_14, window_bounds = array<i64: 1, 8, 128>}]} {
    %c0 = arith.constant 0 : index
    %c0_0 = arith.constant 0 : index
    %c0_1 = arith.constant 0 : index
    %0 = vector.load %arg2[%c0, %c0_0, %c0_1] : memref<1x8x128xf32, #tpu.memory_space<vmem>>, vector<1x8x128xf32>
    %1 = vector.shape_cast %0 : vector<1x8x128xf32> to vector<8x128xf32>
    %c0_2 = arith.constant 0 : index
    %c0_3 = arith.constant 0 : index
    %c0_4 = arith.constant 0 : index
    %2 = vector.load %arg3[%c0_2, %c0_3, %c0_4] : memref<1x16x128xf32, #tpu.memory_space<vmem>>, vector<1x16x128xf32>
    %3 = vector.shape_cast %2 : vector<1x16x128xf32> to vector<16x128xf32>
    %c0_5 = arith.constant 0 : index
    %c0_6 = arith.constant 0 : index
    %c0_7 = arith.constant 0 : index
    %4 = vector.load %arg4[%c0_5, %c0_6, %c0_7] : memref<1x8x128xf32, #tpu.memory_space<vmem>>, vector<1x8x128xf32>
    %5 = vector.shape_cast %4 : vector<1x8x128xf32> to vector<8x128xf32>
    %c0_8 = arith.constant 0 : index
    %c0_9 = arith.constant 0 : index
    %c0_10 = arith.constant 0 : index
    %6 = vector.load %arg5[%c0_8, %c0_9, %c0_10] : memref<1x16x128xf32, #tpu.memory_space<vmem>>, vector<1x16x128xf32>
    %7 = vector.shape_cast %6 : vector<1x16x128xf32> to vector<16x128xf32>
    %c0_11 = arith.constant 0 : index
    %c0_12 = arith.constant 0 : index
    %8 = vector.load %arg14[%c0_11, %c0_12] : memref<1x128xf32, #tpu.memory_space<vmem>>, vector<1x128xf32>
    %c0_13 = arith.constant 0 : index
    %c0_14 = arith.constant 0 : index
    %9 = vector.load %arg15[%c0_13, %c0_14] : memref<1x128xf32, #tpu.memory_space<vmem>>, vector<1x128xf32>
    %10 = arith.addf %1, %5 : vector<8x128xf32>
    %11 = arith.addf %3, %7 : vector<16x128xf32>
    %c0_15 = arith.constant 0 : index
    %c0_16 = arith.constant 0 : index
    %12 = vector.load %arg6[%c0_15, %c0_16] : memref<128x128xf32, #tpu.memory_space<vmem>>, vector<128x128xf32>
    %13 = arith.truncf %10 : vector<8x128xf32> to vector<8x128xbf16>
    %14 = arith.truncf %12 : vector<128x128xf32> to vector<128x128xbf16>
    %cst = arith.constant dense<0.000000e+00> : vector<8x128xf32>
    %15 = tpu.matmul %13, %14, %cst {dimension_numbers = #tpu.dot_dimension_numbers<[1], [0], [0], [1], [0, 0, 1, 1], [], []>} : vector<8x128xbf16>, vector<128x128xbf16>, vector<8x128xf32> -> vector<8x128xf32>
    %c0_17 = arith.constant 0 : index
    %c0_18 = arith.constant 0 : index
    %16 = vector.load %arg10[%c0_17, %c0_18] : memref<1x128xf32, #tpu.memory_space<vmem>>, vector<1x128xf32>
    %17 = vector.broadcast %16 : vector<1x128xf32> to vector<8x128xf32>
    %18 = arith.addf %15, %17 : vector<8x128xf32>
    %c0_19 = arith.constant 0 : index
    %c0_20 = arith.constant 0 : index
    %19 = vector.load %arg7[%c0_19, %c0_20] : memref<128x128xf32, #tpu.memory_space<vmem>>, vector<128x128xf32>
    %20 = arith.truncf %11 : vector<16x128xf32> to vector<16x128xbf16>
    %21 = arith.truncf %19 : vector<128x128xf32> to vector<128x128xbf16>
    %cst_21 = arith.constant dense<0.000000e+00> : vector<16x128xf32>
    %22 = tpu.matmul %20, %21, %cst_21 {dimension_numbers = #tpu.dot_dimension_numbers<[1], [0], [0], [1], [0, 0, 1, 1], [], []>} : vector<16x128xbf16>, vector<128x128xbf16>, vector<16x128xf32> -> vector<16x128xf32>
    %c0_22 = arith.constant 0 : index
    %c0_23 = arith.constant 0 : index
    %23 = vector.load %arg11[%c0_22, %c0_23] : memref<1x128xf32, #tpu.memory_space<vmem>>, vector<1x128xf32>
    %24 = vector.broadcast %23 : vector<1x128xf32> to vector<16x128xf32>
    %25 = arith.addf %22, %24 : vector<16x128xf32>
    %c0_24 = arith.constant 0 : index
    %c0_25 = arith.constant 0 : index
    %26 = vector.load %arg8[%c0_24, %c0_25] : memref<128x128xf32, #tpu.memory_space<vmem>>, vector<128x128xf32>
    %27 = arith.truncf %3 : vector<16x128xf32> to vector<16x128xbf16>
    %28 = arith.truncf %26 : vector<128x128xf32> to vector<128x128xbf16>
    %cst_26 = arith.constant dense<0.000000e+00> : vector<16x128xf32>
    %29 = tpu.matmul %27, %28, %cst_26 {dimension_numbers = #tpu.dot_dimension_numbers<[1], [0], [0], [1], [0, 0, 1, 1], [], []>} : vector<16x128xbf16>, vector<128x128xbf16>, vector<16x128xf32> -> vector<16x128xf32>
    %c0_27 = arith.constant 0 : index
    %c0_28 = arith.constant 0 : index
    %30 = vector.load %arg12[%c0_27, %c0_28] : memref<1x128xf32, #tpu.memory_space<vmem>>, vector<1x128xf32>
    %31 = vector.broadcast %30 : vector<1x128xf32> to vector<16x128xf32>
    %32 = arith.addf %29, %31 : vector<16x128xf32>
    %c0_29 = arith.constant 0 : index
    %c0_30 = arith.constant 0 : index
    %33 = vector.load %arg9[%c0_29, %c0_30] : memref<128x128xf32, #tpu.memory_space<vmem>>, vector<128x128xf32>
    %cst_31 = arith.constant 0.000000e+00 : f32
    %34 = vector.broadcast %cst_31 : f32 to vector<8x128xf32>
    %35 = vector.extract_strided_slice %18 {offsets = [0, 0], sizes = [8, 32], strides = [1, 1]} : vector<8x128xf32> to vector<8x32xf32>
    %cst_32 = arith.constant 0.176776692 : f32
    %36 = vector.broadcast %cst_32 : f32 to vector<8x32xf32>
    %37 = arith.mulf %35, %36 : vector<8x32xf32>
    %38 = arith.truncf %37 : vector<8x32xf32> to vector<8x32xbf16>
    %39 = vector.extract_strided_slice %25 {offsets = [0, 0], sizes = [16, 32], strides = [1, 1]} : vector<16x128xf32> to vector<16x32xf32>
    %40 = arith.truncf %39 : vector<16x32xf32> to vector<16x32xbf16>
    %41 = vector.extract_strided_slice %32 {offsets = [0, 0], sizes = [16, 32], strides = [1, 1]} : vector<16x128xf32> to vector<16x32xf32>
    %42 = arith.truncf %41 : vector<16x32xf32> to vector<16x32xbf16>
    %cst_33 = arith.constant dense<0.000000e+00> : vector<8x16xf32>
    %43 = tpu.matmul %38, %40, %cst_33 {dimension_numbers = #tpu.dot_dimension_numbers<[1], [1], [0], [0], [0, 0, 1, 0], [], []>} : vector<8x32xbf16>, vector<16x32xbf16>, vector<8x16xf32> -> vector<8x16xf32>
    %cst_34 = arith.constant dense<0xFF800000> : vector<8xf32>
    %44 = vector.multi_reduction <maximumf>, %43, %cst_34 [1] : vector<8x16xf32> to vector<8xf32>
    %45 = vector.shape_cast %44 : vector<8xf32> to vector<8x1xf32>
    %46 = vector.broadcast %45 : vector<8x1xf32> to vector<8x16xf32>
    %47 = arith.subf %43, %46 : vector<8x16xf32>
    %48 = math.exp %47 : vector<8x16xf32>
    %cst_35 = arith.constant dense<0.000000e+00> : vector<8xf32>
    %49 = vector.multi_reduction <add>, %48, %cst_35 [1] : vector<8x16xf32> to vector<8xf32>
    %50 = vector.shape_cast %49 : vector<8xf32> to vector<8x1xf32>
    %51 = tpu.reciprocal %50 {approx = true} : vector<8x1xf32> -> vector<8x1xf32>
    %52 = vector.broadcast %51 : vector<8x1xf32> to vector<8x16xf32>
    %53 = arith.mulf %48, %52 : vector<8x16xf32>
    %54 = arith.truncf %53 : vector<8x16xf32> to vector<8x16xbf16>
    %cst_36 = arith.constant dense<0.000000e+00> : vector<8x32xf32>
    %55 = tpu.matmul %54, %42, %cst_36 {dimension_numbers = #tpu.dot_dimension_numbers<[1], [0], [0], [1], [0, 0, 1, 1], [], []>} : vector<8x16xbf16>, vector<16x32xbf16>, vector<8x32xf32> -> vector<8x32xf32>
    %56 = vector.extract_strided_slice %33 {offsets = [0, 0], sizes = [32, 128], strides = [1, 1]} : vector<128x128xf32> to vector<32x128xf32>
    %57 = arith.truncf %55 : vector<8x32xf32> to vector<8x32xbf16>
    %58 = arith.truncf %56 : vector<32x128xf32> to vector<32x128xbf16>
    %cst_37 = arith.constant dense<0.000000e+00> : vector<8x128xf32>
    %59 = tpu.matmul %57, %58, %cst_37 {dimension_numbers = #tpu.dot_dimension_numbers<[1], [0], [0], [1], [0, 0, 1, 1], [], []>} : vector<8x32xbf16>, vector<32x128xbf16>, vector<8x128xf32> -> vector<8x128xf32>
    %60 = arith.addf %34, %59 : vector<8x128xf32>
    %61 = vector.extract_strided_slice %18 {offsets = [0, 32], sizes = [8, 32], strides = [1, 1]} : vector<8x128xf32> to vector<8x32xf32>
    %cst_38 = arith.constant 0.176776692 : f32
    %62 = vector.broadcast %cst_38 : f32 to vector<8x32xf32>
    %63 = arith.mulf %61, %62 : vector<8x32xf32>
    %64 = arith.truncf %63 : vector<8x32xf32> to vector<8x32xbf16>
    %65 = vector.extract_strided_slice %25 {offsets = [0, 32], sizes = [16, 32], strides = [1, 1]} : vector<16x128xf32> to vector<16x32xf32>
    %66 = arith.truncf %65 : vector<16x32xf32> to vector<16x32xbf16>
    %67 = vector.extract_strided_slice %32 {offsets = [0, 32], sizes = [16, 32], strides = [1, 1]} : vector<16x128xf32> to vector<16x32xf32>
    %68 = arith.truncf %67 : vector<16x32xf32> to vector<16x32xbf16>
    %cst_39 = arith.constant dense<0.000000e+00> : vector<8x16xf32>
    %69 = tpu.matmul %64, %66, %cst_39 {dimension_numbers = #tpu.dot_dimension_numbers<[1], [1], [0], [0], [0, 0, 1, 0], [], []>} : vector<8x32xbf16>, vector<16x32xbf16>, vector<8x16xf32> -> vector<8x16xf32>
    %cst_40 = arith.constant dense<0xFF800000> : vector<8xf32>
    %70 = vector.multi_reduction <maximumf>, %69, %cst_40 [1] : vector<8x16xf32> to vector<8xf32>
    %71 = vector.shape_cast %70 : vector<8xf32> to vector<8x1xf32>
    %72 = vector.broadcast %71 : vector<8x1xf32> to vector<8x16xf32>
    %73 = arith.subf %69, %72 : vector<8x16xf32>
    %74 = math.exp %73 : vector<8x16xf32>
    %cst_41 = arith.constant dense<0.000000e+00> : vector<8xf32>
    %75 = vector.multi_reduction <add>, %74, %cst_41 [1] : vector<8x16xf32> to vector<8xf32>
    %76 = vector.shape_cast %75 : vector<8xf32> to vector<8x1xf32>
    %77 = tpu.reciprocal %76 {approx = true} : vector<8x1xf32> -> vector<8x1xf32>
    %78 = vector.broadcast %77 : vector<8x1xf32> to vector<8x16xf32>
    %79 = arith.mulf %74, %78 : vector<8x16xf32>
    %80 = arith.truncf %79 : vector<8x16xf32> to vector<8x16xbf16>
    %cst_42 = arith.constant dense<0.000000e+00> : vector<8x32xf32>
    %81 = tpu.matmul %80, %68, %cst_42 {dimension_numbers = #tpu.dot_dimension_numbers<[1], [0], [0], [1], [0, 0, 1, 1], [], []>} : vector<8x16xbf16>, vector<16x32xbf16>, vector<8x32xf32> -> vector<8x32xf32>
    %82 = vector.extract_strided_slice %33 {offsets = [32, 0], sizes = [32, 128], strides = [1, 1]} : vector<128x128xf32> to vector<32x128xf32>
    %83 = arith.truncf %81 : vector<8x32xf32> to vector<8x32xbf16>
    %84 = arith.truncf %82 : vector<32x128xf32> to vector<32x128xbf16>
    %cst_43 = arith.constant dense<0.000000e+00> : vector<8x128xf32>
    %85 = tpu.matmul %83, %84, %cst_43 {dimension_numbers = #tpu.dot_dimension_numbers<[1], [0], [0], [1], [0, 0, 1, 1], [], []>} : vector<8x32xbf16>, vector<32x128xbf16>, vector<8x128xf32> -> vector<8x128xf32>
    %86 = arith.addf %60, %85 : vector<8x128xf32>
    %87 = vector.extract_strided_slice %18 {offsets = [0, 64], sizes = [8, 32], strides = [1, 1]} : vector<8x128xf32> to vector<8x32xf32>
    %cst_44 = arith.constant 0.176776692 : f32
    %88 = vector.broadcast %cst_44 : f32 to vector<8x32xf32>
    %89 = arith.mulf %87, %88 : vector<8x32xf32>
    %90 = arith.truncf %89 : vector<8x32xf32> to vector<8x32xbf16>
    %91 = vector.extract_strided_slice %25 {offsets = [0, 64], sizes = [16, 32], strides = [1, 1]} : vector<16x128xf32> to vector<16x32xf32>
    %92 = arith.truncf %91 : vector<16x32xf32> to vector<16x32xbf16>
    %93 = vector.extract_strided_slice %32 {offsets = [0, 64], sizes = [16, 32], strides = [1, 1]} : vector<16x128xf32> to vector<16x32xf32>
    %94 = arith.truncf %93 : vector<16x32xf32> to vector<16x32xbf16>
    %cst_45 = arith.constant dense<0.000000e+00> : vector<8x16xf32>
    %95 = tpu.matmul %90, %92, %cst_45 {dimension_numbers = #tpu.dot_dimension_numbers<[1], [1], [0], [0], [0, 0, 1, 0], [], []>} : vector<8x32xbf16>, vector<16x32xbf16>, vector<8x16xf32> -> vector<8x16xf32>
    %cst_46 = arith.constant dense<0xFF800000> : vector<8xf32>
    %96 = vector.multi_reduction <maximumf>, %95, %cst_46 [1] : vector<8x16xf32> to vector<8xf32>
    %97 = vector.shape_cast %96 : vector<8xf32> to vector<8x1xf32>
    %98 = vector.broadcast %97 : vector<8x1xf32> to vector<8x16xf32>
    %99 = arith.subf %95, %98 : vector<8x16xf32>
    %100 = math.exp %99 : vector<8x16xf32>
    %cst_47 = arith.constant dense<0.000000e+00> : vector<8xf32>
    %101 = vector.multi_reduction <add>, %100, %cst_47 [1] : vector<8x16xf32> to vector<8xf32>
    %102 = vector.shape_cast %101 : vector<8xf32> to vector<8x1xf32>
    %103 = tpu.reciprocal %102 {approx = true} : vector<8x1xf32> -> vector<8x1xf32>
    %104 = vector.broadcast %103 : vector<8x1xf32> to vector<8x16xf32>
    %105 = arith.mulf %100, %104 : vector<8x16xf32>
    %106 = arith.truncf %105 : vector<8x16xf32> to vector<8x16xbf16>
    %cst_48 = arith.constant dense<0.000000e+00> : vector<8x32xf32>
    %107 = tpu.matmul %106, %94, %cst_48 {dimension_numbers = #tpu.dot_dimension_numbers<[1], [0], [0], [1], [0, 0, 1, 1], [], []>} : vector<8x16xbf16>, vector<16x32xbf16>, vector<8x32xf32> -> vector<8x32xf32>
    %108 = vector.extract_strided_slice %33 {offsets = [64, 0], sizes = [32, 128], strides = [1, 1]} : vector<128x128xf32> to vector<32x128xf32>
    %109 = arith.truncf %107 : vector<8x32xf32> to vector<8x32xbf16>
    %110 = arith.truncf %108 : vector<32x128xf32> to vector<32x128xbf16>
    %cst_49 = arith.constant dense<0.000000e+00> : vector<8x128xf32>
    %111 = tpu.matmul %109, %110, %cst_49 {dimension_numbers = #tpu.dot_dimension_numbers<[1], [0], [0], [1], [0, 0, 1, 1], [], []>} : vector<8x32xbf16>, vector<32x128xbf16>, vector<8x128xf32> -> vector<8x128xf32>
    %112 = arith.addf %86, %111 : vector<8x128xf32>
    %113 = vector.extract_strided_slice %18 {offsets = [0, 96], sizes = [8, 32], strides = [1, 1]} : vector<8x128xf32> to vector<8x32xf32>
    %cst_50 = arith.constant 0.176776692 : f32
    %114 = vector.broadcast %cst_50 : f32 to vector<8x32xf32>
    %115 = arith.mulf %113, %114 : vector<8x32xf32>
    %116 = arith.truncf %115 : vector<8x32xf32> to vector<8x32xbf16>
    %117 = vector.extract_strided_slice %25 {offsets = [0, 96], sizes = [16, 32], strides = [1, 1]} : vector<16x128xf32> to vector<16x32xf32>
    %118 = arith.truncf %117 : vector<16x32xf32> to vector<16x32xbf16>
    %119 = vector.extract_strided_slice %32 {offsets = [0, 96], sizes = [16, 32], strides = [1, 1]} : vector<16x128xf32> to vector<16x32xf32>
    %120 = arith.truncf %119 : vector<16x32xf32> to vector<16x32xbf16>
    %cst_51 = arith.constant dense<0.000000e+00> : vector<8x16xf32>
    %121 = tpu.matmul %116, %118, %cst_51 {dimension_numbers = #tpu.dot_dimension_numbers<[1], [1], [0], [0], [0, 0, 1, 0], [], []>} : vector<8x32xbf16>, vector<16x32xbf16>, vector<8x16xf32> -> vector<8x16xf32>
    %cst_52 = arith.constant dense<0xFF800000> : vector<8xf32>
    %122 = vector.multi_reduction <maximumf>, %121, %cst_52 [1] : vector<8x16xf32> to vector<8xf32>
    %123 = vector.shape_cast %122 : vector<8xf32> to vector<8x1xf32>
    %124 = vector.broadcast %123 : vector<8x1xf32> to vector<8x16xf32>
    %125 = arith.subf %121, %124 : vector<8x16xf32>
    %126 = math.exp %125 : vector<8x16xf32>
    %cst_53 = arith.constant dense<0.000000e+00> : vector<8xf32>
    %127 = vector.multi_reduction <add>, %126, %cst_53 [1] : vector<8x16xf32> to vector<8xf32>
    %128 = vector.shape_cast %127 : vector<8xf32> to vector<8x1xf32>
    %129 = tpu.reciprocal %128 {approx = true} : vector<8x1xf32> -> vector<8x1xf32>
    %130 = vector.broadcast %129 : vector<8x1xf32> to vector<8x16xf32>
    %131 = arith.mulf %126, %130 : vector<8x16xf32>
    %132 = arith.truncf %131 : vector<8x16xf32> to vector<8x16xbf16>
    %cst_54 = arith.constant dense<0.000000e+00> : vector<8x32xf32>
    %133 = tpu.matmul %132, %120, %cst_54 {dimension_numbers = #tpu.dot_dimension_numbers<[1], [0], [0], [1], [0, 0, 1, 1], [], []>} : vector<8x16xbf16>, vector<16x32xbf16>, vector<8x32xf32> -> vector<8x32xf32>
    %134 = vector.extract_strided_slice %33 {offsets = [96, 0], sizes = [32, 128], strides = [1, 1]} : vector<128x128xf32> to vector<32x128xf32>
    %135 = arith.truncf %133 : vector<8x32xf32> to vector<8x32xbf16>
    %136 = arith.truncf %134 : vector<32x128xf32> to vector<32x128xbf16>
    %cst_55 = arith.constant dense<0.000000e+00> : vector<8x128xf32>
    %137 = tpu.matmul %135, %136, %cst_55 {dimension_numbers = #tpu.dot_dimension_numbers<[1], [0], [0], [1], [0, 0, 1, 1], [], []>} : vector<8x32xbf16>, vector<32x128xbf16>, vector<8x128xf32> -> vector<8x128xf32>
    %138 = arith.addf %112, %137 : vector<8x128xf32>
    %c0_56 = arith.constant 0 : index
    %c0_57 = arith.constant 0 : index
    %139 = vector.load %arg13[%c0_56, %c0_57] : memref<1x128xf32, #tpu.memory_space<vmem>>, vector<1x128xf32>
    %140 = vector.broadcast %139 : vector<1x128xf32> to vector<8x128xf32>
    %141 = arith.addf %138, %140 : vector<8x128xf32>
    %142 = arith.addf %1, %141 : vector<8x128xf32>
    %cst_58 = arith.constant dense<0.000000e+00> : vector<8xf32>
    %143 = vector.multi_reduction <add>, %142, %cst_58 [1] : vector<8x128xf32> to vector<8xf32>
    %144 = vector.shape_cast %143 : vector<8xf32> to vector<8x1xf32>
    %cst_59 = arith.constant 1.280000e+02 : f32
    %145 = vector.broadcast %cst_59 : f32 to vector<8x1xf32>
    %146 = arith.divf %144, %145 : vector<8x1xf32>
    %147 = vector.broadcast %146 : vector<8x1xf32> to vector<8x128xf32>
    %148 = arith.subf %142, %147 : vector<8x128xf32>
    %149 = arith.mulf %148, %148 : vector<8x128xf32>
    %cst_60 = arith.constant dense<0.000000e+00> : vector<8xf32>
    %150 = vector.multi_reduction <add>, %149, %cst_60 [1] : vector<8x128xf32> to vector<8xf32>
    %151 = vector.shape_cast %150 : vector<8xf32> to vector<8x1xf32>
    %cst_61 = arith.constant 1.280000e+02 : f32
    %152 = vector.broadcast %cst_61 : f32 to vector<8x1xf32>
    %153 = arith.divf %151, %152 : vector<8x1xf32>
    %cst_62 = arith.constant 9.99999974E-6 : f32
    %154 = vector.broadcast %cst_62 : f32 to vector<8x1xf32>
    %155 = arith.addf %153, %154 : vector<8x1xf32>
    %156 = math.rsqrt %155 : vector<8x1xf32>
    %157 = vector.broadcast %156 : vector<8x1xf32> to vector<8x128xf32>
    %158 = arith.mulf %148, %157 : vector<8x128xf32>
    %159 = vector.broadcast %8 : vector<1x128xf32> to vector<8x128xf32>
    %160 = arith.mulf %158, %159 : vector<8x128xf32>
    %161 = vector.broadcast %9 : vector<1x128xf32> to vector<8x128xf32>
    %162 = arith.addf %160, %161 : vector<8x128xf32>
    %c0_63 = arith.constant 0 : index
    %c0_64 = arith.constant 0 : index
    %c0_65 = arith.constant 0 : index
    %163 = vector.load %arg16[%c0_63, %c0_64, %c0_65] : memref<1x8x128xf32, #tpu.memory_space<vmem>>, vector<1x8x128xf32>
    %164 = vector.shape_cast %163 : vector<1x8x128xf32> to vector<8x128xf32>
    %165 = vector.shape_cast %162 : vector<8x128xf32> to vector<1x8x128xf32>
    tpu.vector_store %arg16[%c0_63, %c0_64, %c0_65], %165 {strides = array<i32>} : memref<1x8x128xf32, #tpu.memory_space<vmem>>, vector<1x8x128xf32>,
    return
  }
  func.func @transform_0(%arg0: i32, %arg1: i32) -> (i32, i32, i32) {
    %c0_i32 = arith.constant 0 : i32
    %c0_i32_0 = arith.constant 0 : i32
    return %arg0, %arg1, %c0_i32 : i32, i32, i32
  }
  func.func @transform_1(%arg0: i32, %arg1: i32) -> (i32, i32, i32) {
    %c0_i32 = arith.constant 0 : i32
    %c0_i32_0 = arith.constant 0 : i32
    %c0_i32_1 = arith.constant 0 : i32
    return %arg0, %c0_i32, %c0_i32_0 : i32, i32, i32
  }
  func.func @transform_2(%arg0: i32, %arg1: i32) -> (i32, i32, i32) {
    %c0_i32 = arith.constant 0 : i32
    %c0_i32_0 = arith.constant 0 : i32
    return %arg0, %arg1, %c0_i32 : i32, i32, i32
  }
  func.func @transform_3(%arg0: i32, %arg1: i32) -> (i32, i32, i32) {
    %c0_i32 = arith.constant 0 : i32
    %c0_i32_0 = arith.constant 0 : i32
    %c0_i32_1 = arith.constant 0 : i32
    return %arg0, %c0_i32, %c0_i32_0 : i32, i32, i32
  }
  func.func @transform_4(%arg0: i32, %arg1: i32) -> (i32, i32) {
    %c0_i32 = arith.constant 0 : i32
    %c0_i32_0 = arith.constant 0 : i32
    %c0_i32_1 = arith.constant 0 : i32
    return %c0_i32, %c0_i32_0 : i32, i32
  }
  func.func @transform_5(%arg0: i32, %arg1: i32) -> (i32, i32) {
    %c0_i32 = arith.constant 0 : i32
    %c0_i32_0 = arith.constant 0 : i32
    %c0_i32_1 = arith.constant 0 : i32
    return %c0_i32, %c0_i32_0 : i32, i32
  }
  func.func @transform_6(%arg0: i32, %arg1: i32) -> (i32, i32) {
    %c0_i32 = arith.constant 0 : i32
    %c0_i32_0 = arith.constant 0 : i32
    %c0_i32_1 = arith.constant 0 : i32
    return %c0_i32, %c0_i32_0 : i32, i32
  }
  func.func @transform_7(%arg0: i32, %arg1: i32) -> (i32, i32) {
    %c0_i32 = arith.constant 0 : i32
    %c0_i32_0 = arith.constant 0 : i32
    %c0_i32_1 = arith.constant 0 : i32
    return %c0_i32, %c0_i32_0 : i32, i32
  }
  func.func @transform_8(%arg0: i32, %arg1: i32) -> (i32, i32) {
    %c0_i32 = arith.constant 0 : i32
    %c0_i32_0 = arith.constant 0 : i32
    %c0_i32_1 = arith.constant 0 : i32
    return %c0_i32, %c0_i32_0 : i32, i32
  }
  func.func @transform_9(%arg0: i32, %arg1: i32) -> (i32, i32) {
    %c0_i32 = arith.constant 0 : i32
    %c0_i32_0 = arith.constant 0 : i32
    %c0_i32_1 = arith.constant 0 : i32
    return %c0_i32, %c0_i32_0 : i32, i32
  }
  func.func @transform_10(%arg0: i32, %arg1: i32) -> (i32, i32) {
    %c0_i32 = arith.constant 0 : i32
    %c0_i32_0 = arith.constant 0 : i32
    %c0_i32_1 = arith.constant 0 : i32
    return %c0_i32, %c0_i32_0 : i32, i32
  }
  func.func @transform_11(%arg0: i32, %arg1: i32) -> (i32, i32) {
    %c0_i32 = arith.constant 0 : i32
    %c0_i32_0 = arith.constant 0 : i32
    %c0_i32_1 = arith.constant 0 : i32
    return %c0_i32, %c0_i32_0 : i32, i32
  }
  func.func @transform_12(%arg0: i32, %arg1: i32) -> (i32, i32) {
    %c0_i32 = arith.constant 0 : i32
    %c0_i32_0 = arith.constant 0 : i32
    %c0_i32_1 = arith.constant 0 : i32
    return %c0_i32, %c0_i32_0 : i32, i32
  }
  func.func @transform_13(%arg0: i32, %arg1: i32) -> (i32, i32) {
    %c0_i32 = arith.constant 0 : i32
    %c0_i32_0 = arith.constant 0 : i32
    %c0_i32_1 = arith.constant 0 : i32
    return %c0_i32, %c0_i32_0 : i32, i32
  }
  func.func @transform_14(%arg0: i32, %arg1: i32) -> (i32, i32, i32) {
    %c0_i32 = arith.constant 0 : i32
    %c0_i32_0 = arith.constant 0 : i32
    return %arg0, %arg1, %c0_i32 : i32, i32, i32
  }
}

</mosaic_0001>

<bundles_post_ra>
// kernel: tpu_custom_call.1
= control target key start
LH: loop header
LB: loop body
LE: loop exit
PB: predicated region body
PF: predicated region fallthrough
CT: control target
= control target key end

     0   :  { %s2331_s0 = inlined_call_operand.hbm [shape: f32[2,8,128], index: 0, kind: input, shape index: {}]   ;;  %s2332_s1 = inlined_call_operand.hbm [shape: f32[2,16,128], index: 1, kind: input, shape index: {}]   ;;  %s2333_s2 = inlined_call_operand.hbm [shape: f32[2,8,128], index: 2, kind: input, shape index: {}]   ;;  %s2334_s3 = inlined_call_operand.hbm [shape: f32[2,16,128], index: 3, kind: input, shape index: {}]   ;;  %s2335_s4 = inlined_call_operand.hbm [shape: f32[128,128], index: 4, kind: input, shape index: {}]   ;;  %s2336_s5 = inlined_call_operand.hbm [shape: f32[128,128], index: 5, kind: input, shape index: {}]   ;;  %s2337_s6 = inlined_call_operand.hbm [shape: f32[128,128], index: 6, kind: input, shape index: {}]   ;;  %s2338_s7 = inlined_call_operand.hbm [shape: f32[128,128], index: 7, kind: input, shape index: {}]   ;;  %s2339_s8 = inlined_call_operand.vmem [shape: f32[1,128], index: 8, kind: input, shape index: {}]   ;;  %s2340_s9 = inlined_call_operand.vmem [shape: f32[1,128], index: 9, kind: input, shape index: {}]   ;;  %s2341_s10 = inlined_call_operand.vmem [shape: f32[1,128], index: 10, kind: input, shape index: {}]   ;;  %s2342_s11 = inlined_call_operand.vmem [shape: f32[1,128], index: 11, kind: input, shape index: {}]   ;;  %s2343_s12 = inlined_call_operand.vmem [shape: f32[1,128], index: 12, kind: input, shape index: {}]   ;;  %s2344_s13 = inlined_call_operand.vmem [shape: f32[1,128], index: 13, kind: input, shape index: {}]   ;;  %s2345_s14 = inlined_call_operand.hbm [shape: f32[2,8,128], index: 14, kind: output, shape index: {}]  }
   0x1   :  { %2358 = sst [smem:[#allocation31_spill]] %s2331_s0 }
   0x2   :  { %2359 = sst [smem:[#allocation32_spill]] %s2332_s1 }
   0x3   :  { %2360 = sst [smem:[#allocation33_spill]] %s2334_s3 }
   0x4   :  { %2361 = sst [smem:[#allocation34_spill]] %s2335_s4 }
   0x5   :  { %2362 = sst [smem:[#allocation35_spill]] %s2336_s5 }
   0x6   :  { %2363 = sst [smem:[#allocation36_spill]] %s2337_s6 }
   0x7   :  { %2364 = sst [smem:[#allocation37_spill]] %s2339_s8 }
   0x8   :  { %2365 = sst [smem:[#allocation38_spill]] %s2341_s10 }
   0x9   :  { %2366 = sst [smem:[#allocation39_spill]] %s2342_s11 }
   0xa   :  { %2367 = sst [smem:[#allocation40_spill]] %s2343_s12 }
   0xb   :  { %2368 = sst [smem:[#allocation41_spill]] %s2344_s13 }
   0xc   :  { %2369 = sst [smem:[#allocation42_spill]] %s2345_s14 }
   0xd   :  { %19 = vsyncpa [#allocation3], 0 }
   0xe   :  { %21 = vsyncpa [#allocation3 + $0x1], 0 }
   0xf   :  { %22 = vsyncpa [#allocation6], 0 }
  0x10   :  { %24 = vsyncpa [#allocation6 + $0x1], 0 }
  0x11   :  { %25 = vsyncpa [#allocation9], 0 }
  0x12   :  { %27 = vsyncpa [#allocation9 + $0x1], 0 }
  0x13   :  { %28 = vsyncpa [#allocation12], 0 }
  0x14   :  { %29 = vsyncpa [#allocation15], 0 }
  0x15   :  { %30 = vsyncpa [#allocation4], 0 }
  0x16   :  { %32 = vsyncpa [#allocation4 + $0x1], 0  ;;  %s2012_s29 = smov 0   ;;  %s2014_s30 = smov 0  }
  0x17   :  { %s2016_s15 = smov 0   ;;  %s2018_s16 = smov 0  }
  0x18   :  { %s2020_s17 = smov 0   ;;  %s2022_s18 = smov 0  }
  0x19 LB: > { %2370 = sst [smem:[#allocation24_spill]] %s1905_s29  ;;  %s2043_s19 = sadd.s32 4294967295, %s1925_s18   ;;  %s1925_s18 = sphi %s2022_s18, %s38_s18   ;;  %s1921_s17 = sphi %s2020_s17, %s2409_s17   ;;  %s1917_s16 = sphi %s2018_s16, %s2408_s16   ;;  %s1913_s15 = sphi %s2016_s15, %s2404_s15   ;;  %s1909_s30 = sphi %s2014_s30, %s2407_s30   ;;  %s1905_s29 = sphi %s2012_s29, %s2406_s29  }
  0x1a   : > { %2371 = sst [smem:[#allocation25_spill]] %s1913_s15  ;;  %s1388_s20 = sadd.s32 4294967294, %s1925_s18  }
  0x1b   : > { %2372 = sst [smem:[#allocation26_spill]] %s1917_s16  ;;  %p72_p0 = scmp.ne.s32.totalorder %s1909_s30, %s1905_s29 }
  0x1c   : > { %p73_p1 = scmp.eq.s32.totalorder %s2043_s19, 0  ;;  %p388_p2 = scmp.eq.s32.totalorder %s2043_s19, 1 }
  0x1d   : > { %p394_p3 = scmp.eq.s32.totalorder %s1388_s20, 1  ;;  %p1389_p5 = scmp.ge.s32.totalorder %s1925_s18, 1 }
  0x1e   : > { %p2052_p4 = por %p73_p1, %p72_p0  ;;  %p401_p7 = scmp.lt.s32.totalorder %s1925_s18, 3 }
  0x1f   : > { %p2057_p6 = por %p394_p3, %p72_p0  ;;  %s2376_s4 = sld [smem:[#allocation34_spill]] }
  0x20   : > { %p2065_p8 = pnand %p1389_p5, %p401_p7  ;;  %s1927_s27 = smov [#allocation10]  }
  0x21   : > { %s2374_s22 = scalar_select %p2057_p6, 1, 0 }
  0x22   : > { %p1459_p9 = pneg %p2065_p8  ;;  %s414_s28 = sshll.u32 %s1927_s27, 4  ;;  %s415_s28 = int_to_ptr.vmem [resolvable:$true] %s414_s28 }
  0x23   : > { %2375 = sst [smem:[#allocation27_spill]] %s2374_s22  ;;  %s2348_s27 = smov 128  }
  0x24   : > { %p2073_p10 = pnand %p1459_p9, %p73_p1  ;;  %s2379_s5 = sld [smem:[#allocation35_spill]] }
  0x25   : > { %s412_s25 = sshll.u32 %s2376_s4, 4  ;;  %s2350_s22 = smov 8   ;;  %s413_s25 = int_to_ptr.hbm [resolvable:$true] %s412_s25 }
  0x26   : > { %1462 = dma.hbm_to_vmem [thread:$0]  (!%p2073_p10), %s413_s25, 2048, %s415_s28, [#allocation9], %s2348_s27, %s2348_s27, %s2350_s22  }
  0x27   : > { %s1930_s29 = smov [#allocation11]   ;;  %s50_s23 = sadd.s32 1, %s1921_s17 }
  0x28   : > { %s428_s13 = sshll.u32 %s1930_s29, 4  ;;  %s59_s24 = sadd.s32 1, %s1913_s15  ;;  %s429_s13 = int_to_ptr.vmem [resolvable:$true] %s428_s13 }
  0x29   : > { %p52_p12 = scmp.ge.s32.totalorder %s50_s23, 2  ;;  %p66_p13 = scmp.ne.s32.totalorder %s1913_s15, %s1909_s30 }
  0x2a   : > { %s426_s4 = sshll.u32 %s2379_s5, 4  ;;  %p67_p0 = scmp.eq.s32.totalorder %s1925_s18, 0  ;;  %s427_s4 = int_to_ptr.hbm [resolvable:$true] %s426_s4 }
  0x2b   : > { %1465 = dma.hbm_to_vmem [thread:$0]  (!%p2073_p10), %s427_s4, 2048, %s429_s13, [#allocation12], %s2348_s27, %s2348_s27, %s2350_s22  }
  0x2c   : > { %p1493_p3 = scmp.lt.s32.totalorder %s1925_s18, 2  ;;  %s2411_s23 = smov (%p52_p12, %s50_s23), 0 }
  0x2d   : > { %2380 = sst [smem:[#allocation28_spill]] %s2411_s23  ;;  %p68_p5 = por %p67_p0, %p66_p13 }
  0x2e   : > { %p2101_p7 = por %p388_p2, %p66_p13  ;;  %s54_s25 = ssub.s32 %s1921_s17, %s2411_s23 }
  0x2f   : > { %s2108_s4 = sand.u32 1, %s1913_s15   ;;  %p57_p9 = scmp.eq.s32.totalorder %s54_s25, 0 }
  0x30   : > { %s2381_s29 = scalar_select %p2101_p7, 1, 0 }
  0x31   : > { %p2110_p11 = pnand %p1493_p3, %p68_p5  ;;  %s2356_s28 = sand.u32 1, %s1925_s18  }
  0x32   : > { %2382 = sst [smem:[#allocation29_spill]] %s2381_s29  ;;  %s1397_s27 = sshll.u32 %s2108_s4, 4 }
  0x33   : > { %s2117_s22 = scalar_select %p57_p9, %s1913_s15, %s59_s24  }
  0x34   : > { %s1431_s5 = sshll.u32 %s1921_s17, 4  ;;  %s2385_s1 = sld [smem:[#allocation32_spill]] }
  0x35   : > { %2384 = sst [smem:[#allocation30_spill]] %s2117_s22  ;;  %s512_s29 = scalar_lea.vmem [#allocation5], %s1397_s27 }
  0x36   : > { %s520_s23 = sshll.u32 %s512_s29, 4  ;;  %s2125_s25 = scalar_lea.sflag [#allocation6], %s2356_s28  ;;  %s521_s23 = int_to_ptr.vmem [resolvable:$true] %s520_s23 }
  0x37   : > { %s2386_s10 = smov 8   ;;  %s2387_s8 = smov 128  }
  0x38   : > { %s2388_s3 = sld [smem:[#allocation33_spill]]  ;;  %s554_s29 = scalar_lea.vmem [#allocation8], %s1397_s27 }
  0x39   : > { %s2389_s6 = sld [smem:[#allocation36_spill]]  ;;  %s454_s27 = sshll.u32 %s2338_s7, 4  ;;  %s455_s27 = int_to_ptr.hbm [resolvable:$true] %s454_s27 }
  0x3a   : > { %s517_s16 = scalar_lea.hbm %s2385_s1, %s1431_s5  ;;  %s1932_s24 = smov [#allocation14]  }
  0x3b   : > { %s518_s11 = sshll.u32 %s517_s16, 4  ;;  %s562_s16 = sshll.u32 %s554_s29, 4  ;;  %s519_s11 = int_to_ptr.hbm [resolvable:$true] %s518_s11  ;;  %s2138_s16 = int_to_ptr.vmem [resolvable:$true] %s562_s16 }
  0x3c   : > { %1478 = dma.hbm_to_vmem [thread:$0]  (!%p2110_p11), %s519_s11, 256, %s521_s23, %s2125_s25, %s2387_s8, %s2387_s8, %s2386_s10  }
  0x3d   : > { %s1931_s11 = smov [#allocation13]   ;;  %s1395_s1 = sshll.u32 %s2108_s4, 3 }
  0x3e   : > { %s559_s12 = scalar_lea.hbm %s2388_s3, %s1431_s5  ;;  %s442_s23 = sshll.u32 %s1931_s11, 4  ;;  %s443_s23 = int_to_ptr.vmem [resolvable:$true] %s442_s23 }
  0x3f   : > { %s560_s14 = sshll.u32 %s559_s12, 4  ;;  %s440_s15 = sshll.u32 %s2389_s6, 4  ;;  %s2136_s14 = int_to_ptr.hbm [resolvable:$true] %s560_s14  ;;  %s441_s15 = int_to_ptr.hbm [resolvable:$true] %s440_s15 }
  0x40   : > { %1468 = dma.hbm_to_vmem [thread:$0]  (!%p2073_p10), %s441_s15, 2048, %s443_s23, [#allocation12], %s2387_s8, %s2387_s8, %s2386_s10  }
  0x41   : > { %s456_s12 = sshll.u32 %s1932_s24, 4  ;;  %s1396_s28 = sshll.u32 %s1921_s17, 3  ;;  %s457_s12 = int_to_ptr.vmem [resolvable:$true] %s456_s12 }
  0x42   : > { %1471 = dma.hbm_to_vmem [thread:$0]  (!%p2073_p10), %s455_s27, 2048, %s457_s12, [#allocation15], %s2387_s8, %s2387_s8, %s2386_s10  }
  0x43   : > { %s2390_s0 = sld [smem:[#allocation31_spill]]  ;;  %s492_s15 = scalar_lea.vmem [#allocation2], %s1395_s1 }
  0x44   : > { %s501_s23 = sshll.u32 %s492_s15, 4  ;;  %s489_s20 = scalar_lea.sflag [#allocation3], %s2108_s4  ;;  %s502_s23 = int_to_ptr.vmem [resolvable:$true] %s501_s23 }
  0x45   : > { %s539_s12 = scalar_lea.hbm %s2333_s2, %s1396_s28  ;;  %s534_s3 = scalar_lea.vmem [#allocation7], %s1395_s1 }
  0x46   : > { %s543_s6 = sshll.u32 %s534_s3, 4  ;;  %s541_s29 = sshll.u32 %s539_s12, 4  ;;  %s544_s6 = int_to_ptr.vmem [resolvable:$true] %s543_s6  ;;  %s542_s29 = int_to_ptr.hbm [resolvable:$true] %s541_s29 }
  0x47   : > { %1481 = dma.hbm_to_vmem [thread:$0]  (!%p2110_p11), %s542_s29, 128, %s544_s6, %s2125_s25  }
  0x48   : > { %s2391_s11 = sand.u32 1, %s1925_s18   ;;  %574 = sbr.rel (%p2065_p8) target bundleno = 1746 (0x6d2), region = 76 }
  0x49   : > { %s497_s22 = scalar_lea.hbm %s2390_s0, %s1396_s28  ;;  %s551_s0 = scalar_lea.sflag [#allocation9], %s2391_s11 }
  0x4a   : > { %s499_s5 = sshll.u32 %s497_s22, 4  ;;  %s2182_s4 = sand.u32 (!%p2065_p8), 1, %s1909_s30   ;;  %s500_s5 = int_to_ptr.hbm [resolvable:$true] %s499_s5 }
  0x4b   : > { %1475 = dma.hbm_to_vmem [thread:$0]  (!%p2110_p11), %s500_s5, 128, %s502_s23, %s489_s20  }
  0x4c   : > { %1484 = dma.hbm_to_vmem [thread:$0]  (!%p2110_p11), %s2136_s14, 256, %s2138_s16, %s551_s0, %s2387_s8, %s2387_s8, %s2386_s10  }
  0x4d   : > { %s2185_s3 = sshll.u32 %s2182_s4, 3  ;;  %s577_s6 = scalar_lea.sflag [#allocation3], %s2182_s4 }
  0x4e   : > { %s580_s25 = scalar_lea.vmem [#allocation2], %s2185_s3 }
  0x4f   : > { %1876 = dma.done.wait (%p2052_p4), %s577_s6, 128  }
  0x50   : > { %1878 = vsyncadd (%p2052_p4), %s577_s6, 4294967168  ;;  %s586_s0 = sand.u32 1, %s2043_s19   ;;  %s1407_s8 = sshll.u32 %s2182_s4, 4 }
  0x51   : > { %s587_s10 = scalar_lea.sflag [#allocation6], %s586_s0  ;;  %s2195_s26 = scalar_lea.vmem [#allocation5], %s1407_s8 }
  0x52   : > { %1880 = dma.done.wait (%p2052_p4), %s587_s10, 384  }
  0x53   : > { %1882 = vsyncadd (%p2052_p4), %s587_s10, 4294966912  ;;  %s600_s13 = scalar_lea.vmem [#allocation7], %s2185_s3  ;;  %s607_s14 = scalar_lea.sflag [#allocation9], %s586_s0 }
  0x54   : > { %s2202_s16 = scalar_lea.vmem [#allocation8], %s1407_s8 }
  0x55   : > { %1884 = dma.done.wait (%p2052_p4), %s607_s14, 256  }
  0x56   : > { %1886 = vsyncadd (%p2052_p4), %s607_s14, 4294967040 }
  0x57   : > { %1888 = dma.done.wait (%p73_p1), [#allocation9], 2048  }
  0x58   : > { %1890 = vsyncadd (%p73_p1), [#allocation9], 4294965248 }
  0x59   : > { %1892 = dma.done.wait (%p73_p1), [#allocation12], 4096  }
  0x5a   : > { %1894 = vsyncadd (%p73_p1), [#allocation12], 4294963200 }
  0x5b   : > { %1896 = dma.done.wait (%p73_p1), [#allocation15], 2048  }
  0x5c   : > { %1898 = vsyncadd (%p73_p1), [#allocation15], 4294965248  ;;  %v759_v0 = vld [vmem:[#allocation11 + $0x70] sm:$0xff]  ;;  %v760_v1 = vld [vmem:[#allocation11 + $0x78] sm:$0xff]  ;;  %s2392_s22 = sld [smem:[#allocation37_spill]]  ;;  %vm851_vm0 = vcmask 261120  }
  0x5d   : > { %v757_v2 = vld [vmem:[#allocation11 + $0x60] sm:$0xff]  ;;  %v769_v3 = vpack.c.bf16 %v760_v1, %v759_v0  ;;  %v758_v4 = vld [vmem:[#allocation11 + $0x68] sm:$0xff]  ;;  %v717_v5 = vld [vmem:[#allocation10 + $0x70] sm:$0xff]  ;;  %s1933_s15 = smov 32   ;;  %s1934_s23 = smov 96   ;;  %vm871_vm1 = vcmask 130048  }
  0x5e   : > { %v718_v6 = vld [vmem:[#allocation10 + $0x78] sm:$0xff]  ;;  %v715_v8 = vld [vmem:[#allocation10 + $0x60] sm:$0xff]  ;;  %v768_v9 = vpack.c.bf16 %v758_v4, %v757_v2  ;;  %v716_v10 = vld [vmem:[#allocation10 + $0x68] sm:$0xff]  ;;  %s1935_s5 = smov 64   ;;  %s2393_s24 = sld [smem:[#allocation38_spill]] }
  0x5f   : > { %v727_v7 = vpack.c.bf16 %v718_v6, %v717_v5  ;;  %774 = vmatpush.bf16.msra.mxu1 %v769_v3  ;;  %v755_v11 = vld [vmem:[#allocation11 + $0x50] sm:$0xff]  ;;  %v756_v12 = vld [vmem:[#allocation11 + $0x58] sm:$0xff]  ;;  %v726_v13 = vpack.c.bf16 %v716_v10, %v715_v8  ;;  %v753_v17 = vld [vmem:[#allocation11 + $0x40] sm:$0xff]  ;;  %s2394_s11 = sld [smem:[#allocation39_spill]] }
  0x60   : > { %v713_v14 = vld [vmem:[#allocation10 + $0x50] sm:$0xff]  ;;  %v714_v15 = vld [vmem:[#allocation10 + $0x58] sm:$0xff]  ;;  %v767_v16 = vpack.c.bf16 %v756_v12, %v755_v11  ;;  %v754_v18 = vld [vmem:[#allocation11 + $0x48] sm:$0xff]  ;;  %s2395_s6 = sld [smem:[#allocation26_spill]] }
  0x61   : > { %732 = vmatpush.bf16.msra.mxu0 %v727_v7  ;;  %v725_v19 = vpack.c.bf16 %v714_v15, %v713_v14  ;;  %v711_v20 = vld [vmem:[#allocation10 + $0x40] sm:$0xff]  ;;  %v712_v21 = vld [vmem:[#allocation10 + $0x48] sm:$0xff]  ;;  %v766_v22 = vpack.c.bf16 %v754_v18, %v753_v17  ;;  %v751_v23 = vld [vmem:[#allocation11 + $0x30] sm:$0xff]  ;;  %s2396_s10 = sld [smem:[#allocation40_spill]] }
  0x62   : > { %v752_v24 = vld [vmem:[#allocation11 + $0x38] sm:$0xff]  ;;  %v724_v25 = vpack.c.bf16 %v712_v21, %v711_v20  ;;  %v709_v26 = vld [vmem:[#allocation10 + $0x30] sm:$0xff]  ;;  %v800_v30 = vld [vmem:[#allocation13 + $0x60] sm:$0xff]  ;;  %s2397_s14 = sld [smem:[#allocation42_spill]] }
  0x63   : > { %775 = vmatpush.bf16.msra.mxu1 %v768_v9  ;;  %v710_v27 = vld [vmem:[#allocation10 + $0x38] sm:$0xff]  ;;  %v802_v28 = vld [vmem:[#allocation13 + $0x70] sm:$0xff]  ;;  %v801_v31 = vld [vmem:[#allocation13 + $0x68] sm:$0xff]  ;;  %v765_v33 = vpack.c.bf16 %v752_v24, %v751_v23  ;;  %s2399_s28 = sld [smem:[#allocation41_spill]] }
  0x64   : > { %v803_v29 = vld [vmem:[#allocation13 + $0x78] sm:$0xff]  ;;  %v749_v34 = vld [vmem:[#allocation11 + $0x20] sm:$0xff]  ;;  %v750_v35 = vld [vmem:[#allocation11 + $0x28] sm:$0xff]  ;;  %v723_v36 = vpack.c.bf16 %v710_v27, %v709_v26  ;;  %v811_v38 = vpack.c.bf16 %v801_v31, %v800_v30 }
  0x65   : > { %733 = vmatpush.bf16.msra.mxu0 %v726_v13  ;;  %v812_v32 = vpack.c.bf16 %v803_v29, %v802_v28  ;;  %v707_v37 = vld [vmem:[#allocation10 + $0x20] sm:$0xff]  ;;  %v708_v39 = vld [vmem:[#allocation10 + $0x28] sm:$0xff]  ;;  %v798_v40 = vld [vmem:[#allocation13 + $0x50] sm:$0xff]  ;;  %v764_v43 = vpack.c.bf16 %v750_v35, %v749_v34 }
  0x66   : > { %v799_v41 = vld [vmem:[#allocation13 + $0x58] sm:$0xff]  ;;  %v747_v42 = vld [vmem:[#allocation11 + $0x10] sm:$0xff]  ;;  %v722_v45 = vpack.c.bf16 %v708_v39, %v707_v37  ;;  %v796_v49 = vld [vmem:[#allocation13 + $0x40] sm:$0xff] }
  0x67   : > { %776 = vmatpush.bf16.msra.mxu1 %v767_v16  ;;  %817 = vmatpush.bf16.msra.mxu2 %v812_v32  ;;  %v748_v44 = vld [vmem:[#allocation11 + $0x18] sm:$0xff]  ;;  %v705_v46 = vld [vmem:[#allocation10 + $0x10] sm:$0xff]  ;;  %v810_v47 = vpack.c.bf16 %v799_v41, %v798_v40  ;;  %v797_v50 = vld [vmem:[#allocation13 + $0x48] sm:$0xff] }
  0x68   : > { %v706_v48 = vld [vmem:[#allocation10 + $0x18] sm:$0xff]  ;;  %v745_v51 = vld [vmem:[#allocation11] sm:$0xff]  ;;  %v746_v52 = vld [vmem:[#allocation11 + $0x8] sm:$0xff]  ;;  %v763_v54 = vpack.c.bf16 %v748_v44, %v747_v42  ;;  %v809_v62 = vpack.c.bf16 %v797_v50, %v796_v49  ;;  %s1843_s29 = scalar_lea.hbm %s2397_s14, 16 }
  0x69   : > { %734 = vmatpush.bf16.msra.mxu0 %v725_v19  ;;  %v693_v53 = vld [vmem:[%s2195_s26] sm:$0xff]  ;;  %v694_v55 = vld [vmem:[%s2195_s26 + $0x8] sm:$0xff]  ;;  %v696_v56 = vld [vmem:[%s2202_s16] sm:$0xff]  ;;  %v721_v58 = vpack.c.bf16 %v706_v48, %v705_v46  ;;  %v762_v4 = vpack.c.bf16 %v746_v52, %v745_v51 }
  0x6a   : > { %v697_v57 = vld [vmem:[%s2202_s16 + $0x8] sm:$0xff]  ;;  %v703_v59 = vld [vmem:[#allocation10] sm:$0xff]  ;;  %v794_v0 = vld [vmem:[#allocation13 + $0x30] sm:$0xff]  ;;  %v701_v2 = vadd.f32 %v696_v56, %v693_v53  ;;  %v804_v19 = vpack.c.bf16 %v694_v55, %v693_v53 }
  0x6b   : > { %777 = vmatpush.bf16.msra.mxu1 %v766_v22  ;;  %818 = vmatpush.bf16.msra.mxu2 %v811_v38  ;;  %v2226_v60 = vld [vmem:[%s580_s25] sm:$0xff]  ;;  %v695_v61 = vld [vmem:[%s600_s13] sm:$0xff]  ;;  %v702_v3 = vadd.f32 %v697_v57, %v694_v55  ;;  %s1428_s25 = sshll.u32 %s2395_s6, 3 }
  0x6c   : > { %v704_v63 = vld [vmem:[#allocation10 + $0x8] sm:$0xff]  ;;  %v795_v1 = vld [vmem:[#allocation13 + $0x38] sm:$0xff]  ;;  %v700_v5 = vadd.f32 %v695_v61, %v2226_v60  ;;  %v792_v8 = vld [vmem:[#allocation13 + $0x20] sm:$0xff]  ;;  %s1197_s16 = scalar_lea.hbm %s2397_s14, %s1428_s25 }
  0x6d   : > { %735 = vmatpush.bf16.msra.mxu0 %v724_v25  ;;  %v720_v6 = vpack.c.bf16 %v704_v63, %v703_v59  ;;  %v808_v7 = vpack.c.bf16 %v795_v1, %v794_v0  ;;  %v793_v9 = vld [vmem:[#allocation13 + $0x28] sm:$0xff]  ;;  %v761_v10 = vpack.c.bf16 %v702_v3, %v701_v2  ;;  %v790_v13 = vld [vmem:[#allocation13 + $0x10] sm:$0xff]  ;;  %v791_v14 = vld [vmem:[#allocation13 + $0x18] sm:$0xff] }
  0x6e   : > { %v719_v11 = vpack.c.bf16 %v700_v5, %v700_v5  ;;  %v807_v12 = vpack.c.bf16 %v793_v9, %v792_v8  ;;  %v806_v15 = vpack.c.bf16 %v791_v14, %v790_v13  ;;  %v788_v16 = vld [vmem:[#allocation13] sm:$0xff]  ;;  %v789_v17 = vld [vmem:[#allocation13 + $0x8] sm:$0xff]  ;;  %v833_v20 = vld [vmem:[#allocation14 + $0x10] sm:$0xff] }
  0x6f   : > { %778 = vmatpush.bf16.msra.mxu1 %v765_v33  ;;  %819 = vmatpush.bf16.msra.mxu2 %v810_v47  ;;  %v805_v18 = vpack.c.bf16 %v789_v17, %v788_v16  ;;  %v834_v21 = vld [vmem:[#allocation14 + $0x18] sm:$0xff]  ;;  %v1557_v25 = vld [vmem:[%s2340_s9] ss:$0 sm:$0xff]  ;;  %v832_v37 = vld [vmem:[#allocation14 + $0x8] sm:$0xff] }
  0x70   : > { %v902_v22 = vpack.c.bf16 %v834_v21, %v833_v20  ;;  %v1558_v26 = vld [vmem:[%s2392_s22] ss:$0 sm:$0xff]  ;;  %s690_s22 = scalar_lea.vmem [#allocation16], %s2185_s3 }
  0x71   : > { %736 = vmatpush.bf16.msra.mxu0 %v723_v36  ;;  %v831_v36 = vld [vmem:[#allocation14] sm:$0xff] }
  0x72   : > { %v901_v38 = vpack.c.bf16 %v832_v37, %v831_v36  ;;  %v1559_v40 = vld [vmem:[%s2393_s24] ss:$0 sm:$0xff]  ;;  %v837_v36 = vld [vmem:[#allocation14 + $0x30] sm:$0xff]  ;;  %v838_v37 = vld [vmem:[#allocation14 + $0x38] sm:$0xff] }
  0x73   : > { %779 = vmatpush.bf16.msra.mxu1 %v764_v43  ;;  %820 = vmatpush.bf16.msra.mxu2 %v809_v62 }
  0x75   : > { %737 = vmatpush.bf16.msra.mxu0 %v722_v45 }
  0x77   : > { %780 = vmatpush.bf16.msra.mxu1 %v763_v54  ;;  %821 = vmatpush.bf16.msra.mxu2 %v808_v7 }
  0x79   : > { %738 = vmatpush.bf16.msra.mxu0 %v721_v58 }
  0x7b   : > { %781 = vmatpush.bf16.msra.mxu1 %v762_v4  ;;  %822 = vmatpush.bf16.msra.mxu2 %v807_v12 }
  0x7d   : > { %739 = vmatpush.bf16.msra.mxu0 %v720_v6 }
  0x7e   : > { %782 = vmatmul.bf16.vlgmr.msra.gmra.mxu1 %v761_v10 }
  0x7f   : > { %823 = vmatpush.bf16.msra.mxu2 %v806_v15 }
  0x80   : > { %740 = vmatmul.bf16.vlgmr.msra.gmra.mxu0 %v719_v11 }
  0x83   : > { %824 = vmatpush.bf16.msra.mxu2 %v805_v18 }
  0x86   : > { %825 = vmatmul.bf16.vlgmr.msra.gmra.mxu2 %v804_v19 }
  0x87   : > { %988 = vmatpush.bf16.msrb.mxu2 %v902_v22 }
  0x8b   : > { %989 = vmatpush.bf16.msrb.mxu2 %v901_v38  ;;  %v962_v38 = vpack.c.bf16 %v838_v37, %v837_v36 }
  0x8d   : > { %972 = vmatpush.bf16.msrb.mxu1 %v962_v38 }
  0xfb   : > { %v783_v23 = vpop.f32.mrf.mxu1 }
  0xfc   : > { %v784_v28 = vadd.f32 %v1557_v25, %v783_v23 }
  0xfd   : > { %v741_v24 = vpop.f32.mrf.mxu0 }
  0xfe   : > { %v742_v29 = vadd.f32 %v1558_v26, %v741_v24 }
 0x100   : > { %v847_v33 = vmul.f32 0.17677669, %v742_v29 }
 0x102   : > { %v848_v35 = vpack.c.bf16 %v847_v33, %v847_v33 }
 0x103   : > { %v785_v27 = vpop.f32.mrf.mxu1 }
 0x104   : > { %v786_v30 = vadd.f32 %v1557_v25, %v785_v27 }
 0x105   : > { %v743_v31 = vpop.f32.mrf.mxu0 }
 0x106   : > { %v849_v32 = vpack.c.bf16 %v786_v30, %v784_v28 }
 0x108   : > { %1071 = vrot.lane.b32.xlu2 %v849_v32, %s1933_s15  ;;  %907 = vrot.lane.b32.xlu1 %v849_v32, %s1934_s23  ;;  %v856_v34 = vsel %vm851_vm0, %v849_v32, 0 }
 0x109   : > { %865 = vmatpush.bf16.xpose.msra.mxu3 %v856_v34  ;;  %v826_v39 = vpop.f32.mrf.mxu2 }
 0x10a   : > { %v827_v41 = vadd.f32 %v1559_v40, %v826_v39 }
 0x110   : > { %997 = vrot.lane.b32.xlu2 %v849_v32, %s1935_s5  ;;  %904 = vrot.lane.b32.xlu1 %v848_v35, %s1934_s23 }
 0x111   : > { %1415 = vmatmul.msk.bf16.vlgmr.msra.gmra.mxu3 %vm851_vm0, %v848_v35  ;;  %v828_v42 = vpop.f32.mrf.mxu2 }
 0x112   : > { %v829_v43 = vadd.f32 %v1559_v40, %v828_v42  ;;  %v836_v42 = vld [vmem:[#allocation14 + $0x28] sm:$0xff] }
 0x114   : > { %v2247_v44 = vpack.c.bf16 %v829_v43, %v827_v41  ;;  %v835_v41 = vld [vmem:[#allocation14 + $0x20] sm:$0xff] }
 0x115   : > { %v961_v43 = vpack.c.bf16 %v836_v42, %v835_v41  ;;  %v1561_v42 = vld [vmem:[%s2396_s10] ss:$0 sm:$0xff] }
 0x116   : > { %894 = vmatpush.bf16.msrb.mxu3 %v2247_v44 }
 0x117   : > { %973 = vmatpush.bf16.msrb.mxu1 %v961_v43 }
 0x118   : > { %995 = vrot.lane.b32.xlu1 %v848_v35, %s1935_s5 }
 0x162   : > { %v1072_v45 = vpop.permute.xlu2 %1071 }
 0x163   : > { %v1077_v46 = vsel %vm851_vm0, %v1072_v45, 0 }
 0x164   : > { %1086 = vmatpush.bf16.xpose.msra.mxu2 %v1077_v46 }
 0x16a   : > { %v998_v61 = vpop.permute.xlu2 %997 }
 0x16b   : > { %v1003_v63 = vsel %vm851_vm0, %v998_v61, 0  ;;  %v844_v61 = vld [vmem:[#allocation14 + $0x68] sm:$0xff] }
 0x17a   : > { %v908_v47 = vpop.permute.xlu1 %907 }
 0x17b   : > { %v913_v48 = vsel %vm851_vm0, %v908_v47, 0 }
 0x17c   : > { %922 = vmatpush.bf16.xpose.msra.mxu3 %v913_v48 }
 0x182   : > { %v905_v0 = vpop.permute.xlu1 %904 }
 0x18a   : > { %v996_v1 = vpop.permute.xlu1 %995 }
 0x194   : > { %v867_v49 = vpop.f32.mrf.mxu3 }
 0x195   : > { %v872_v50 = vsel %vm871_vm1, %v867_v49, -inf }
 0x196   : > { %873 = vmax.xlane.f32.xlu0 %v872_v50 }
 0x19c   : > { %v869_v51 = vpop.f32.mrf.mxu3 }
 0x209   : > { %v874_v52 = vpop.xlane.xlu0 %873 }
 0x20a   : > { %v875_v53 = vsub.f32 %v867_v49, %v874_v52 }
 0x20c   : > { %v876_v54 = vmul.f32 1.442695, %v875_v53 }
 0x20e   : > { %1563 = vpow2.f32 %v876_v54 }
 0x214   : > { %v1564_v55 = vpop.eup %1563 }
 0x215   : > { %v878_v56 = vsel %vm871_vm1, %v1564_v55, 0.0 }
 0x216   : > { %879 = vadd.xlane.f32.xlu0 %v878_v56  ;;  %v845_v56 = vld [vmem:[#allocation14 + $0x70] sm:$0xff] }
 0x22a   : > { %1069 = vrot.lane.b32.xlu0 %v848_v35, %s1933_s15 }
 0x289   : > { %v880_v57 = vpop.xlane.xlu0 %879 }
 0x28a   : > { %1565 = vrcp.f32 %v880_v57  ;;  %v846_v57 = vld [vmem:[#allocation14 + $0x78] sm:$0xff] }
 0x290   : > { %v1566_v58 = vpop.eup %1565 }
 0x291   : > { %v882_v59 = vmul.f32 %v1566_v58, %v1564_v55  ;;  %v1125_v58 = vpack.c.bf16 %v846_v57, %v845_v56 }
 0x293   : > { %v883_v62 = vpack.c.bf16 %v882_v59, %v882_v59  ;;  %v843_v59 = vld [vmem:[#allocation14 + $0x60] sm:$0xff] }
 0x295   : > { %1416 = vmatmul.msk.bf16.vlgmr.msrb.gmra.mxu3 %vm871_vm1, %v883_v62  ;;  %v1124_v62 = vpack.c.bf16 %v844_v61, %v843_v59 }
 0x296   : > { %1012 = vmatpush.bf16.xpose.msrb.mxu3 %v1003_v63  ;;  %v841_v63 = vld [vmem:[#allocation14 + $0x50] sm:$0xff] }
 0x29c   : > { %v1070_v7 = vpop.permute.xlu0 %1069 }
 0x2a5   : > { %1417 = vmatmul.msk.bf16.vlgmr.msra.gmra.mxu3 %vm851_vm0, %v905_v0  ;;  %v842_v0 = vld [vmem:[#allocation14 + $0x58] sm:$0xff] }
 0x2b5   : > { %1421 = vmatmul.msk.bf16.vlgmr.msrb.gmra.mxu3 %vm851_vm0, %v996_v1  ;;  %v1051_v1 = vpack.c.bf16 %v842_v0, %v841_v63 }
 0x2b7   : > { %1061 = vmatpush.bf16.msra.mxu1 %v1051_v1 }
 0x318   : > { %v896_v2 = vpop.f32.mrf.mxu3 }
 0x319   : > { %v900_v3 = vpack.c.bf16 %v896_v2, %v896_v2  ;;  %v839_v2 = vld [vmem:[#allocation14 + $0x40] sm:$0xff] }
 0x31b   : > { %1420 = vmatmul.msk.bf16.vlgmr.msrb.gmra.mxu2 %vm851_vm0, %v900_v3  ;;  %v840_v3 = vld [vmem:[#allocation14 + $0x48] sm:$0xff] }
 0x320   : > { %v898_v4 = vpop.f32.mrf.mxu3 }
 0x321   : > { %v1050_v4 = vpack.c.bf16 %v840_v3, %v839_v2 }
 0x323   : > { %1062 = vmatpush.bf16.msra.mxu1 %v1050_v4 }
 0x328   : > { %v924_v5 = vpop.f32.mrf.mxu3 }
 0x329   : > { %v928_v6 = vsel %vm871_vm1, %v924_v5, -inf }
 0x32a   : > { %929 = vmax.xlane.f32.xlu2 %v928_v6 }
 0x32b   : > { %1424 = vmatmul.msk.bf16.vlgmr.msra.gmra.mxu2 %vm851_vm0, %v1070_v7 }
 0x330   : > { %v926_v8 = vpop.f32.mrf.mxu3 }
 0x338   : > { %v1014_v9 = vpop.f32.mrf.mxu3 }
 0x339   : > { %v1018_v10 = vsel %vm871_vm1, %v1014_v9, -inf }
 0x33a   : > { %1019 = vmax.xlane.f32.xlu0 %v1018_v10 }
 0x340   : > { %v1016_v11 = vpop.f32.mrf.mxu3 }
 0x34e   : > { %1104 = vrot.lane.b32.xlu0 %v2247_v44, %s1933_s15  ;;  %s1199_s15 = sshll.u32 %s690_s22, 4  ;;  %s1200_s15 = int_to_ptr.vmem [resolvable:$true] %s1199_s15 }
 0x39d   : > { %v930_v12 = vpop.xlane.xlu2 %929 }
 0x39e   : > { %v931_v13 = vsub.f32 %v924_v5, %v930_v12  ;;  %v2265_v14 = vpop.f32.mrf.mxu2 }
 0x3a0   : > { %v932_v15 = vmul.f32 1.442695, %v931_v13 }
 0x3a2   : > { %1567 = vpow2.f32 %v932_v15 }
 0x3a6   : > { %v993_v16 = vpop.f32.mrf.mxu2 }
 0x3a8   : > { %v1568_v17 = vpop.eup %1567 }
 0x3a9   : > { %v934_v18 = vsel %vm871_vm1, %v1568_v17, 0.0 }
 0x3aa   : > { %935 = vadd.xlane.f32.xlu2 %v934_v18 }
 0x3ad   : > { %v1020_v19 = vpop.xlane.xlu0 %1019 }
 0x3ae   : > { %v1021_v20 = vsub.f32 %v1014_v9, %v1020_v19  ;;  %v1088_v21 = vpop.f32.mrf.mxu2  ;;  %v1560_v19 = vld [vmem:[%s2394_s11] ss:$0 sm:$0xff] }
 0x3af   : > { %v1092_v22 = vsel %vm871_vm1, %v1088_v21, -inf }
 0x3b0   : > { %v1022_v23 = vmul.f32 1.442695, %v1021_v20  ;;  %1093 = vmax.xlane.f32.xlu1 %v1092_v22 }
 0x3b2   : > { %1569 = vpow2.f32 %v1022_v23 }
 0x3b6   : > { %v1090_v24 = vpop.f32.mrf.mxu2 }
 0x3b7   : > { %v1936_v24 = vmov 128.0  }
 0x3b8   : > { %v1570_v25 = vpop.eup %1569 }
 0x3b9   : > { %v1024_v26 = vsel %vm871_vm1, %v1570_v25, 0.0 }
 0x3ba   : > { %1025 = vadd.xlane.f32.xlu1 %v1024_v26 }
 0x3c0   : > { %v1105_v27 = vpop.permute.xlu0 %1104 }
 0x3c1   : > { %1117 = vmatpush.bf16.msra.mxu3 %v1105_v27 }
 0x3c2   : > { %941 = vrot.lane.b32.xlu2 %v2247_v44, %s1934_s23  ;;  %s1201_s23 = sshll.u32 %s1197_s16, 4  ;;  %s1202_s23 = int_to_ptr.hbm [resolvable:$true] %s1201_s23 }
 0x3c3   : > { %s1837_s20 = sshra.s32 %s1202_s23, 4  ;;  %s1838_s20 = int_to_ptr.hbm [resolvable:$true] %s1837_s20 }
 0x3c4   : > { %s1839_s27 = scalar_lea.hbm %s1838_s20, 8  ;;  %p1844_p8 = scmp.lt.s32.totalorder %s1838_s20, %s2397_s14 }
 0x3c5   : > { %p1840_p1 = scmp.ne.s32.totalorder %s1838_s20, %s1839_s27  ;;  %p1845_p10 = scmp.lt.s32.totalorder %s1843_s29, %s1839_s27 }
 0x3c7   : > { %p1841_p2 = pnand %p1840_p1, %p2101_p7  ;;  %p1846_p11 = por %p1845_p10, %p1844_p8 }
 0x3c9   : > { %p1842_p4 = pneg %p1841_p2 }
 0x3cb   : > { %p1847_p12 = pnand %p1846_p11, %p1842_p4 }
 0x41d   : > { %v936_v28 = vpop.xlane.xlu2 %935 }
 0x41e   : > { %1571 = vrcp.f32 %v936_v28 }
 0x423   : > { %v1094_v29 = vpop.xlane.xlu1 %1093 }
 0x424   : > { %v1572_v30 = vpop.eup %1571  ;;  %v1095_v31 = vsub.f32 %v1088_v21, %v1094_v29 }
 0x425   : > { %v938_v32 = vmul.f32 %v1572_v30, %v1568_v17  ;;  %v942_v33 = vpop.permute.xlu2 %941 }
 0x426   : > { %v1096_v34 = vmul.f32 1.442695, %v1095_v31  ;;  %954 = vmatpush.bf16.msrb.mxu0 %v942_v33 }
 0x427   : > { %v939_v35 = vpack.c.bf16 %v938_v32, %v938_v32 }
 0x428   : > { %1573 = vpow2.f32 %v1096_v34 }
 0x429   : > { %1418 = vmatmul.msk.bf16.vlgmr.msrb.gmra.mxu0 %vm871_vm1, %v939_v35 }
 0x42d   : > { %v1026_v45 = vpop.xlane.xlu1 %1025 }
 0x42e   : > { %v1574_v39 = vpop.eup %1573 }
 0x42f   : > { %v1098_v40 = vsel %vm871_vm1, %v1574_v39, 0.0 }
 0x430   : > { %1099 = vadd.xlane.f32.xlu1 %v1098_v40 }
 0x449   : > { %1030 = vrot.lane.b32.xlu1 %v2247_v44, %s1935_s5  ;;  %s1186_s5 = scalar_lea.sflag [#allocation4], %s2182_s4 }
 0x4a3   : > { %v1100_v46 = vpop.xlane.xlu1 %1099 }
 0x4a4   : > { %1575 = vrcp.f32 %v1100_v46  ;;  %v1562_v46 = vld [vmem:[%s2399_s28] ss:$0 sm:$0xff] }
 0x4a5   : > { %1577 = vrcp.f32 %v1026_v45 }
 0x4a6   : > { %v956_v47 = vpop.f32.mrf.mxu0  ;;  %1579 = vrcp.f32 %v1936_v24 }
 0x4a7   : > { %v960_v48 = vpack.c.bf16 %v956_v47, %v956_v47 }
 0x4a9   : > { %1419 = vmatmul.msk.bf16.vlgmr.msrb.gmra.mxu1 %vm851_vm0, %v960_v48 }
 0x4aa   : > { %v1576_v49 = vpop.eup %1575 }
 0x4ab   : > { %v1102_v50 = vmul.f32 %v1576_v49, %v1574_v39  ;;  %v1578_v53 = vpop.eup %1577 }
 0x4ac   : > { %v1028_v44 = vmul.f32 %v1578_v53, %v1570_v25  ;;  %v1580_v25 = vpop.eup %1579 }
 0x4ad   : > { %v1103_v51 = vpack.c.bf16 %v1102_v50, %v1102_v50  ;;  %v1152_v26 = vmul.f32 128.0, %v1580_v25  ;;  %vm1156_vm2 = vweird.f32 %v1580_v25 }
 0x4ae   : > { %v958_v52 = vpop.f32.mrf.mxu0  ;;  %v1029_v55 = vpack.c.bf16 %v1028_v44, %v1028_v44 }
 0x4af   : > { %1425 = vmatmul.msk.bf16.vlgmr.msra.gmra.mxu3 %vm871_vm1, %v1103_v51  ;;  %v1153_v27 = vsub.f32 1.0, %v1152_v26 }
 0x4b1   : > { %v1154_v28 = vmul.f32 %v1580_v25, %v1153_v27 }
 0x4b3   : > { %v1155_v29 = vadd.f32 %v1580_v25, %v1154_v28 }
 0x4bb   : > { %v1031_v54 = vpop.permute.xlu1 %1030 }
 0x4bc   : > { %1043 = vmatpush.bf16.msra.mxu0 %v1031_v54 }
 0x4bf   : > { %1422 = vmatmul.msk.bf16.vlgmr.msra.gmra.mxu0 %vm871_vm1, %v1029_v55 }
 0x4c0   : > { %1135 = vmatpush.bf16.msrb.mxu0 %v1125_v58 }
 0x4c4   : > { %1136 = vmatpush.bf16.msrb.mxu0 %v1124_v62 }
 0x526   : > { %v975_v5 = vpop.f32.mrf.mxu1 }
 0x527   : > { %v992_v16 = vadd.f32 %v2265_v14, %v975_v5  ;;  %v1157_v14 = vsel %vm1156_vm2, %v1580_v25, %v1155_v29 }
 0x52e   : > { %v977_v6 = vpop.f32.mrf.mxu1 }
 0x532   : > { %v1119_v7 = vpop.f32.mrf.mxu3 }
 0x533   : > { %v1123_v8 = vpack.c.bf16 %v1119_v7, %v1119_v7 }
 0x535   : > { %1426 = vmatmul.msk.bf16.vlgmr.msrb.gmra.mxu0 %vm851_vm0, %v1123_v8 }
 0x53a   : > { %v1121_v9 = vpop.f32.mrf.mxu3 }
 0x53c   : > { %v1045_v10 = vpop.f32.mrf.mxu0 }
 0x53d   : > { %v1049_v11 = vpack.c.bf16 %v1045_v10, %v1045_v10 }
 0x53f   : > { %1423 = vmatmul.msk.bf16.vlgmr.msra.gmra.mxu1 %vm851_vm0, %v1049_v11 }
 0x544   : > { %v1047_v12 = vpop.f32.mrf.mxu0 }
 0x5b2   : > { %v1138_v13 = vpop.f32.mrf.mxu0 }
 0x5ba   : > { %v1140_v15 = vpop.f32.mrf.mxu0 }
 0x5bc   : > { %v1064_v17 = vpop.f32.mrf.mxu1 }
 0x5bd   : > { %v1068_v18 = vadd.f32 %v1064_v17, %v992_v16 }
 0x5bf   : > { %v1142_v20 = vadd.f32 %v1138_v13, %v1068_v18 }
 0x5c1   : > { %v1147_v21 = vadd.f32 %v1560_v19, %v1142_v20 }
 0x5c3   : > { %v1148_v22 = vadd.f32 %v1147_v21, %v2226_v60 }
 0x5c4   : > { %v1066_v23 = vpop.f32.mrf.mxu1 }
 0x5c5   : > { %1149 = vadd.xlane.f32.xlu2 %v1148_v22 }
 0x638   : > { %v1150_v30 = vpop.xlane.xlu2 %1149 }
 0x639   : > { %v1158_v31 = vmul.f32 %v1157_v14, %v1150_v30 }
 0x63b   : > { %v1159_v32 = vsub.f32 %v1148_v22, %v1158_v31 }
 0x63d   : > { %v1160_v33 = vmul.f32 %v1159_v32, %v1159_v32 }
 0x63f   : > { %1161 = vadd.xlane.f32.xlu0 %v1160_v33 }
 0x6b2   : > { %v1162_v34 = vpop.xlane.xlu0 %1161 }
 0x6b3   : > { %v1163_v35 = vmul.f32 %v1162_v34, %v1157_v14 }
 0x6b5   : > { %v1164_v60 = vadd.f32 1e-05, %v1163_v35 }
 0x6b7   : > { %1581 = vrsqrt.f32 %v1164_v60  ;;  %vm1171_vm4 = vweird.f32 %v1164_v60 }
 0x6bd   : > { %v1582_v36 = vpop.eup %1581 }
 0x6be   : > { %v1166_v37 = vmul.f32 %v1582_v36, %v1164_v60  ;;  %vm1172_vm3 = vweird.f32 %v1582_v36 }
 0x6bf   : > { %vm1173_vm5 = vmor %vm1171_vm4, %vm1172_vm3 }
 0x6c0   : > { %v1167_v38 = vmul.f32 %v1582_v36, %v1166_v37 }
 0x6c2   : > { %v1168_v39 = vmul.f32 0.5, %v1167_v38 }
 0x6c4   : > { %v1169_v40 = vsub.f32 1.5, %v1168_v39 }
 0x6c6   : > { %v1170_v41 = vmul.f32 %v1582_v36, %v1169_v40 }
 0x6c8   : > { %v1174_v43 = vsel %vm1173_vm5, %v1582_v36, %v1170_v41 }
 0x6c9   : > { %v1175_v45 = vmul.f32 %v1174_v43, %v1159_v32 }
 0x6cb   : > { %v1179_v47 = vmul.f32 %v1561_v42, %v1175_v45 }
 0x6cd   : > { %v1183_v48 = vadd.f32 %v1562_v46, %v1179_v47 }
 0x6cf   : > { %1184 = vst [vmem:[%s690_s22] sm:$0xff] %v1183_v48 }
 0x6d0   : > { %1850 = shalt.err (!%p1847_p12)
}
 0x6d1   : > { %1457 = dma.vmem_to_hbm [thread:$0]  (%p2101_p7), %s1200_s15, 128, %s1202_s23, %s1186_s5  }
 0x6d2 PF: > { %s2400_s4 = sld [smem:[#allocation24_spill]]  ;;  %p2402_p13 = scmp.ge.s32.totalorder %s1925_s18, 2 }
 0x6d4   : > { %p1486_p0 = pnand %p2402_p13, %p2057_p6 }
 0x6d6   : > { %p1487_p3 = pneg %p1486_p0 }
 0x6d8   : > { %s1213_s25 = sand.u32 1, %s2400_s4  }
 0x6d9   : > { %s1214_s0 = scalar_lea.sflag [#allocation4], %s1213_s25 }
 0x6da   : > { %1900 = dma.done.wait (%p1487_p3), %s1214_s0, 128  }
 0x6db   : > { %1902 = vsyncadd (%p1487_p3), %s1214_s0, 4294967168  ;;  %s38_s18 = sadd.s32 1, %s1925_s18   ;;  %s2403_s8 = sld [smem:[#allocation25_spill]] }
 0x6dc   : > { %p35_p5 = scmp.ge.s32.totalorder %s38_s18, 4   ;;  %s2404_s15 = sld [smem:[#allocation30_spill]] }
 0x6dd   : > { %s2405_s10 = sld [smem:[#allocation28_spill]]  ;;  %s2406_s29 = smov %s1909_s30 }
 0x6de   : > { %s2408_s16 = smov %s1921_s17 }
 0x6df   :  { %37 = sbr.rel (!%p35_p5) target bundleno = 25 (0x19), region = 174 }
 0x6e1   : > { %s2407_s30 = smov %s2403_s8 }
 0x6e3   : > { %s2409_s17 = smov %s2405_s10 }
 0x6e4   :  { %1220 = vsyncpa [#allocation3], 1 }
 0x6e5   :  { %1222 = vsyncpa [#allocation3 + $0x1], 1 }
 0x6e6   :  { %1223 = vsyncpa [#allocation6], 1 }
 0x6e7   :  { %1225 = vsyncpa [#allocation6 + $0x1], 1 }
 0x6e8   :  { %1226 = vsyncpa [#allocation9], 1 }
 0x6e9   :  { %1228 = vsyncpa [#allocation9 + $0x1], 1 }
 0x6ea   :  { %1229 = vsyncpa [#allocation12], 1 }
 0x6eb   :  { %1230 = vsyncpa [#allocation15], 1 }
 0x6ec   :  { %1231 = vsyncpa [#allocation4], 1 }
 0x6ed   :  { %1233 = vsyncpa [#allocation4 + $0x1], 1 }

</bundles_post_ra>
